<compile_context>
chip_gen: v7x
topology: tpu7x:2x2x1
jax: 0.10.0
libtpu: 0.0.40
codegen_flags: <defaults>
</compile_context>

<pallas_src>
import numpy as np
import jax
import jax.numpy as jnp
from jax.experimental import pallas as pl
from jax.experimental.pallas import tpu as pltpu

# --- small, forward-consistent sizes -----------------------------------------------------------
H = 32             # config.hidden_size (== REDecoder input_size == context_dim)
H2 = H // 2        # BiaffineAttention in_features
B, T = 2, 16       # batch, max_n_words
RPAD = 8           # padded total number of relation candidates (sublane-aligned)
LANES = 128        # 2H (head repr) + 2H (tail repr) == 128 -> exactly lane-dense
LOGIT_LANE = 2 * H2  # the 2 logits live in lanes [32, 34) of the fused product / output

# bslab row layout (f32, one aligned (8,128) tile)
RB_B1, RB_B2, RB_BL, RB_S0, RB_S1 = 0, 1, 2, 3, 4


# --- Pallas kernel: fused FFNN head/tail + biaffine classifier + cross-entropy -----------------
def _re_logits_loss_kernel(x_ref, w_ref, b_ref, aux_ref, logits_ref, loss_ref):
    f32 = jnp.float32
    bf16 = jnp.bfloat16

    x = x_ref[...]                         # (RPAD, 128) f32 = [head_repr | tail_repr]

    bias = b_ref[...]                      # (8, 128) f32 -- single aligned vld
    b1 = bias[RB_B1:RB_B1 + 1, :]          # [b1h | b1t]   lanes 0:64
    b2 = bias[RB_B2:RB_B2 + 1, :]          # [b2h | b2t]   lanes 0:32
    blr = bias[RB_BL:RB_BL + 1, :]         # blin          lanes 32:34
    sel0 = bias[RB_S0:RB_S0 + 1, :]        # one-hot lane 32
    sel1 = bias[RB_S1:RB_S1 + 1, :]        # one-hot lane 33

    W1 = w_ref[0]                          # (128,128) bf16 block-diag layer 1
    W2 = w_ref[1]                          # (128,128) bf16 block-diag layer 2
    UW = w_ref[2]                          # (128,128) bf16 fused [u0 | u1 | wlin]

    # Fused ffnn_head/ffnn_tail: Linear -> ReLU -> [Dropout=id] -> Linear -> ReLU.
    # bf16 operands (single-pass MXU), f32 accumulation, f32 bias-add/ReLU.
    h1 = jnp.maximum(jnp.dot(x.astype(bf16), W1, preferred_element_type=f32) + b1, 0.0)
    ht = jnp.maximum(jnp.dot(h1.astype(bf16), W2, preferred_element_type=f32) + b2, 0.0)

    # BiaffineAttention: ONE fused MXU pass yields
    #   lanes 0:16  = heads @ u0,  lanes 16:32 = heads @ u1,  lanes 32:34 = Linear(cat(heads,tails))
    fused = jnp.dot(ht.astype(bf16), UW, preferred_element_type=f32)
    tails = ht[:, H2:2 * H2]                                            # (RPAD, 16) f32
    bil0 = jnp.sum(fused[:, 0:H2] * tails, axis=-1, keepdims=True)      # (RPAD, 1)
    bil1 = jnp.sum(fused[:, H2:2 * H2] * tails, axis=-1, keepdims=True)

    # Place bilinear terms into lanes 32/33 via the precomputed one-hot selector rows.
    logits_wide = fused + blr + bil0 * sel0 + bil1 * sel1
    logits_ref[...] = logits_wide                                        # unmasked lane-dense vst

    # CrossEntropyLoss (mean over valid candidate rows), 2-way, on the narrow logit lanes.
    aux = aux_ref[...]                                                   # (RPAD, 2): [label_f, valid]
    lab = aux[:, 0:1]
    valid = aux[:, 1:2]
    l0 = logits_wide[:, LOGIT_LANE:LOGIT_LANE + 1]
    l1 = logits_wide[:, LOGIT_LANE + 1:LOGIT_LANE + 2]
    m = jnp.maximum(l0, l1)
    lse = m + jnp.log(jnp.exp(l0 - m) + jnp.exp(l1 - m))
    picked = jnp.where(lab > 0.5, l1, l0)
    ce = (lse - picked) * valid
    loss_ref[0] = jnp.sum(ce) / jnp.maximum(jnp.sum(valid), 1.0)         # guarded denominator


_VMEM = pl.BlockSpec(memory_space=pltpu.MemorySpace.VMEM)
_SMEM = pl.BlockSpec(memory_space=pltpu.MemorySpace.SMEM)

_COST = pl.CostEstimate(
    flops=3 * RPAD * LANES * LANES * 2,                # three 128x128 MXU passes at M=RPAD
    transcendentals=3 * RPAD,                          # exp/log in the CE loss
    bytes_accessed=(3 * LANES * LANES * 2)             # bf16 weight slab
    + (8 * LANES * 4)                                  # f32 bias/selector slab
    + (RPAD * LANES * 4) * 2                           # x in, logits out
    + (RPAD * 2 * 4) + 4,                              # aux in, loss out
)

_re_logits_loss_call = pl.pallas_call(
    _re_logits_loss_kernel,
    out_shape=(jax.ShapeDtypeStruct((RPAD, LANES), jnp.float32),
               jax.ShapeDtypeStruct((1,), jnp.float32)),
    in_specs=[_VMEM, _VMEM, _VMEM, _VMEM],
    out_specs=(_VMEM, _SMEM),
    cost_estimate=_COST,
)


@jax.jit
def re_logits_loss_pallas(xin, wslab, bslab, aux):
    logits_wide, loss = _re_logits_loss_call(xin, wslab, bslab, aux)
    return logits_wide, loss[0]


# --- plain-JAX reference (debug only; NOT on the production forward path) -----------------------
def re_logits_loss_ref(head_repr, tail_repr, p, labels, valid):
    # Mirrors the kernel's MXU precision: bf16 operands, f32 accumulation.
    bf16, f32 = jnp.bfloat16, jnp.float32

    def mm(a, w):
        return jnp.dot(a.astype(bf16), w.astype(bf16), preferred_element_type=f32)

    h1 = jax.nn.relu(mm(head_repr, p["w1h"]) + p["b1h"])
    heads = jax.nn.relu(mm(h1, p["w2h"]) + p["b2h"])
    t1 = jax.nn.relu(mm(tail_repr, p["w1t"]) + p["b1t"])
    tails = jax.nn.relu(mm(t1, p["w2t"]) + p["b2t"])
    bil = jnp.stack([jnp.sum(mm(heads, p["bil"][k]) * tails, axis=-1) for k in range(2)], axis=-1)
    lin = mm(jnp.concatenate([heads, tails], axis=-1), p["wlin"]) + p["blin"]
    logits = bil + lin
    logp = jax.nn.log_softmax(logits, axis=-1)
    picked = jnp.take_along_axis(logp, labels, axis=-1)
    loss = -jnp.sum(picked * valid) / jnp.sum(valid)
    return logits, loss


# --- parameter init (deterministic, synthetic) ---------------------------------------------------
def init_params(key):
    ks = jax.random.split(key, 12)
    s = 0.1
    f = jnp.float32
    return {
        "entity_emb": s * jax.random.normal(ks[0], (3, H), f),        # nn.Embedding(3, input_size)
        "w1h": s * jax.random.normal(ks[1], (2 * H, H), f),           # ffnn_head Linear(2H, H)
        "b1h": s * jax.random.normal(ks[2], (1, H), f),
        "w2h": s * jax.random.normal(ks[3], (H, H2), f),              # ffnn_head Linear(H, H/2)
        "b2h": s * jax.random.normal(ks[4], (1, H2), f),
        "w1t": s * jax.random.normal(ks[5], (2 * H, H), f),           # ffnn_tail
        "b1t": s * jax.random.normal(ks[6], (1, H), f),
        "w2t": s * jax.random.normal(ks[7], (H, H2), f),
        "b2t": s * jax.random.normal(ks[8], (1, H2), f),
        "bil": s * jax.random.normal(ks[9], (2, H2, H2), f),          # Bilinear(H/2, H/2, 2), no bias
        "wlin": s * jax.random.normal(ks[10], (2 * H2, 2), f),        # Linear(H, 2)  (stored (in,out))
        "blin": s * jax.random.normal(ks[11], (1, 2), f),
    }


def pack_params(p):
    """Pack parameters ONCE into (wslab bf16 (3,128,128), bslab f32 (8,128))."""
    W = np.zeros((3, LANES, LANES), np.float32)
    # layer 1 block-diag: input lanes [head(64)|tail(64)] -> output lanes [h1(32)|t1(32)]
    W[0, 0:2 * H, 0:H] = np.asarray(p["w1h"])
    W[0, 2 * H:4 * H, H:2 * H] = np.asarray(p["w1t"])
    # layer 2 block-diag: input lanes [h1(32)|t1(32)] -> output lanes [heads(16)|tails(16)]
    W[1, 0:H, 0:H2] = np.asarray(p["w2h"])
    W[1, H:2 * H, H2:2 * H2] = np.asarray(p["w2t"])
    # fused bilinear + biaffine linear:
    #   rows 0:16  (heads lanes): u0 -> lanes 0:16, u1 -> lanes 16:32, wlin[0:16] -> lanes 32:34
    #   rows 16:32 (tails lanes): wlin[16:32] -> lanes 32:34
    bil = np.asarray(p["bil"])
    wlin = np.asarray(p["wlin"])
    W[2, 0:H2, 0:H2] = bil[0]
    W[2, 0:H2, H2:2 * H2] = bil[1]
    W[2, 0:2 * H2, LOGIT_LANE:LOGIT_LANE + 2] = wlin
    wslab = jnp.asarray(W).astype(jnp.bfloat16)

    Bt = np.zeros((8, LANES), np.float32)
    Bt[RB_B1, 0:H] = np.asarray(p["b1h"]).reshape(-1)
    Bt[RB_B1, H:2 * H] = np.asarray(p["b1t"]).reshape(-1)
    Bt[RB_B2, 0:H2] = np.asarray(p["b2h"]).reshape(-1)
    Bt[RB_B2, H2:2 * H2] = np.asarray(p["b2t"]).reshape(-1)
    Bt[RB_BL, LOGIT_LANE:LOGIT_LANE + 2] = np.asarray(p["blin"]).reshape(-1)
    Bt[RB_S0, LOGIT_LANE] = 1.0      # selector for bil0 -> lane 32
    Bt[RB_S1, LOGIT_LANE + 1] = 1.0  # selector for bil1 -> lane 33
    bslab = jnp.asarray(Bt)
    return wslab, bslab


# --- REDecoder.build_relation (host-side Python, faithful to the PyTorch logic) ------------------
def build_relation(relations, entities):
    new_relations = []
    for b in range(len(relations)):
        if len(entities[b]["start"]) <= 2:
            entities[b] = {"end": [1, 1], "label": [0, 0], "start": [0, 0]}
        all_possible = set(
            (i, j)
            for i in range(len(entities[b]["label"]))
            for j in range(len(entities[b]["label"]))
            if entities[b]["label"][i] == 1 and entities[b]["label"][j] == 2
        )
        if len(all_possible) == 0:
            all_possible = {(0, 1)}
        positive = set(zip(relations[b]["head"], relations[b]["tail"]))
        negative = all_possible - positive
        positive = set(i for i in positive if i in all_possible)
        reordered = list(positive) + list(negative)
        per_doc = {
            "head": [i[0] for i in reordered],
            "tail": [i[1] for i in reordered],
            "label": [1] * len(positive) + [0] * (len(reordered) - len(positive)),
        }
        assert len(per_doc["head"]) != 0
        new_relations.append(per_doc)
    return new_relations, entities


# --- REHead.forward ------------------------------------------------------------------------------
def re_head_forward(sequence_output, entities, relations, params, packed_params,
                    check_numerics=False):
    # REHead.dropout -> identity (eval mode)
    hidden_states = np.asarray(sequence_output)
    relations, entities = build_relation(relations, entities)

    emb = np.asarray(params["entity_emb"])
    xin = np.zeros((RPAD, LANES), np.float32)        # [head_repr(64) | tail_repr(64)] per candidate
    aux = np.zeros((RPAD, 2), np.float32)            # [:,0]=label (float), [:,1]=valid
    labels_i = np.zeros((RPAD, 1), np.int32)
    row_meta = []
    n = 0
    for b in range(len(relations)):
        starts = np.asarray(entities[b]["start"])
        labs = np.asarray(entities[b]["label"])
        for r in range(len(relations[b]["head"])):
            hid = relations[b]["head"][r]
            tid = relations[b]["tail"][r]
            xin[n, 0:2 * H] = np.concatenate([hidden_states[b, starts[hid]], emb[labs[hid]]])
            xin[n, 2 * H:] = np.concatenate([hidden_states[b, starts[tid]], emb[labs[tid]]])
            labels_i[n, 0] = relations[b]["label"][r]
            aux[n, 0] = float(relations[b]["label"][r])
            aux[n, 1] = 1.0
            row_meta.append((b, hid, tid))
            n += 1
    assert 0 < n <= RPAD

    wslab, bslab = packed_params
    xin_j, aux_j = jnp.asarray(xin), jnp.asarray(aux)
    logits_wide, loss = re_logits_loss_pallas(xin_j, wslab, bslab, aux_j)

    if check_numerics:  # debug only: not part of the production forward path
        ref_logits, ref_loss = re_logits_loss_ref(
            xin_j[:, :2 * H], xin_j[:, 2 * H:], params,
            jnp.asarray(labels_i), jnp.asarray(aux[:, 1:2]))
        np.testing.assert_allclose(
            np.asarray(logits_wide)[:, LOGIT_LANE:LOGIT_LANE + 2], np.asarray(ref_logits),
            rtol=5e-3, atol=5e-3)
        np.testing.assert_allclose(float(loss), float(ref_loss), rtol=5e-3, atol=5e-3)

    # REDecoder.get_predicted_relations (host glue)
    logits_np = np.asarray(logits_wide)[:n, LOGIT_LANE:LOGIT_LANE + 2]
    pred = logits_np.argmax(-1)
    all_pred_relations = [[] for _ in range(len(relations))]
    for i, (b, hid, tid) in enumerate(row_meta):
        if pred[i] != 1:
            continue
        ent = entities[b]
        all_pred_relations[b].append({
            "head_id": hid, "head": (ent["start"][hid], ent["end"][hid]),
            "head_type": ent["label"][hid],
            "tail_id": tid, "tail": (ent["start"][tid], ent["end"][tid]),
            "tail_type": ent["label"][tid], "type": 1,
        })

    return {"loss": loss, "logits": logits_wide[:n, LOGIT_LANE:LOGIT_LANE + 2],
            "entities": entities, "relations": relations,
            "pred_relations": all_pred_relations}


if __name__ == "__main__":
    key = jax.random.PRNGKey(0)
    k_params, k_seq = jax.random.split(key)
    params = init_params(k_params)
    packed_params = pack_params(params)          # one-time host-side packing -> 2 aligned slabs

    sequence_output = jax.random.normal(k_seq, (B, T, H), jnp.float32)

    entities = [
        {"start": [0, 2, 5, 8, 11], "end": [1, 4, 7, 10, 13], "label": [0, 1, 2, 1, 2]},
        {"start": [0, 3, 6], "end": [2, 5, 8], "label": [1, 2, 1]},
    ]
    relations = [
        {"head": [1], "tail": [2]},
        {"head": [0], "tail": [1]},
    ]

    out = re_head_forward(sequence_output, entities, relations, params, packed_params,
                          check_numerics=True)
    jax.block_until_ready(out["loss"])
    jax.block_until_ready(out["logits"])
    print("KERNEL_OK")
</pallas_src>

<mosaic_0001>
module attributes {stable_mosaic.version = 11 : i64} {
  func.func @_re_logits_loss_kernel(%arg0: memref<8x128xf32, #tpu.memory_space<vmem>>, %arg1: memref<3x128x128xbf16, #tpu.memory_space<vmem>>, %arg2: memref<8x128xf32, #tpu.memory_space<vmem>>, %arg3: memref<8x2xf32, #tpu.memory_space<vmem>>, %arg4: memref<8x128xf32, #tpu.memory_space<vmem>>, %arg5: memref<1xf32, #tpu.memory_space<smem>>) attributes {dimension_semantics = [], scalar_prefetch = 0 : i64, scratch_operands = 0 : i64, tpu.core_type = #tpu.core_type<tc>} {
    %c0 = arith.constant 0 : index
    %c0_0 = arith.constant 0 : index
    %0 = vector.load %arg0[%c0, %c0_0] : memref<8x128xf32, #tpu.memory_space<vmem>>, vector<8x128xf32>
    %c0_1 = arith.constant 0 : index
    %c0_2 = arith.constant 0 : index
    %1 = vector.load %arg2[%c0_1, %c0_2] : memref<8x128xf32, #tpu.memory_space<vmem>>, vector<8x128xf32>
    %2 = vector.extract_strided_slice %1 {offsets = [0, 0], sizes = [1, 128], strides = [1, 1]} : vector<8x128xf32> to vector<1x128xf32>
    %3 = vector.extract_strided_slice %1 {offsets = [1, 0], sizes = [1, 128], strides = [1, 1]} : vector<8x128xf32> to vector<1x128xf32>
    %4 = vector.extract_strided_slice %1 {offsets = [2, 0], sizes = [1, 128], strides = [1, 1]} : vector<8x128xf32> to vector<1x128xf32>
    %5 = vector.extract_strided_slice %1 {offsets = [3, 0], sizes = [1, 128], strides = [1, 1]} : vector<8x128xf32> to vector<1x128xf32>
    %6 = vector.extract_strided_slice %1 {offsets = [4, 0], sizes = [1, 128], strides = [1, 1]} : vector<8x128xf32> to vector<1x128xf32>
    %c0_3 = arith.constant 0 : index
    %c0_4 = arith.constant 0 : index
    %c0_5 = arith.constant 0 : index
    %7 = vector.load %arg1[%c0_3, %c0_4, %c0_5] : memref<3x128x128xbf16, #tpu.memory_space<vmem>>, vector<1x128x128xbf16>
    %8 = vector.shape_cast %7 : vector<1x128x128xbf16> to vector<128x128xbf16>
    %c1 = arith.constant 1 : index
    %c0_6 = arith.constant 0 : index
    %c0_7 = arith.constant 0 : index
    %9 = vector.load %arg1[%c1, %c0_6, %c0_7] : memref<3x128x128xbf16, #tpu.memory_space<vmem>>, vector<1x128x128xbf16>
    %10 = vector.shape_cast %9 : vector<1x128x128xbf16> to vector<128x128xbf16>
    %c2 = arith.constant 2 : index
    %c0_8 = arith.constant 0 : index
    %c0_9 = arith.constant 0 : index
    %11 = vector.load %arg1[%c2, %c0_8, %c0_9] : memref<3x128x128xbf16, #tpu.memory_space<vmem>>, vector<1x128x128xbf16>
    %12 = vector.shape_cast %11 : vector<1x128x128xbf16> to vector<128x128xbf16>
    %13 = arith.truncf %0 : vector<8x128xf32> to vector<8x128xbf16>
    %cst = arith.constant dense<0.000000e+00> : vector<8x128xf32>
    %14 = tpu.matmul %13, %8, %cst {dimension_numbers = #tpu.dot_dimension_numbers<[1], [0], [0], [1], [0, 0, 1, 1], [], []>} : vector<8x128xbf16>, vector<128x128xbf16>, vector<8x128xf32> -> vector<8x128xf32>
    %15 = vector.broadcast %2 : vector<1x128xf32> to vector<8x128xf32>
    %16 = arith.addf %14, %15 : vector<8x128xf32>
    %cst_10 = arith.constant 0.000000e+00 : f32
    %17 = vector.broadcast %cst_10 : f32 to vector<8x128xf32>
    %18 = arith.maximumf %16, %17 : vector<8x128xf32>
    %19 = arith.truncf %18 : vector<8x128xf32> to vector<8x128xbf16>
    %cst_11 = arith.constant dense<0.000000e+00> : vector<8x128xf32>
    %20 = tpu.matmul %19, %10, %cst_11 {dimension_numbers = #tpu.dot_dimension_numbers<[1], [0], [0], [1], [0, 0, 1, 1], [], []>} : vector<8x128xbf16>, vector<128x128xbf16>, vector<8x128xf32> -> vector<8x128xf32>
    %21 = vector.broadcast %3 : vector<1x128xf32> to vector<8x128xf32>
    %22 = arith.addf %20, %21 : vector<8x128xf32>
    %cst_12 = arith.constant 0.000000e+00 : f32
    %23 = vector.broadcast %cst_12 : f32 to vector<8x128xf32>
    %24 = arith.maximumf %22, %23 : vector<8x128xf32>
    %25 = arith.truncf %24 : vector<8x128xf32> to vector<8x128xbf16>
    %cst_13 = arith.constant dense<0.000000e+00> : vector<8x128xf32>
    %26 = tpu.matmul %25, %12, %cst_13 {dimension_numbers = #tpu.dot_dimension_numbers<[1], [0], [0], [1], [0, 0, 1, 1], [], []>} : vector<8x128xbf16>, vector<128x128xbf16>, vector<8x128xf32> -> vector<8x128xf32>
    %27 = vector.extract_strided_slice %24 {offsets = [0, 16], sizes = [8, 16], strides = [1, 1]} : vector<8x128xf32> to vector<8x16xf32>
    %28 = vector.extract_strided_slice %26 {offsets = [0, 0], sizes = [8, 16], strides = [1, 1]} : vector<8x128xf32> to vector<8x16xf32>
    %29 = arith.mulf %28, %27 : vector<8x16xf32>
    %cst_14 = arith.constant dense<0.000000e+00> : vector<8xf32>
    %30 = vector.multi_reduction <add>, %29, %cst_14 [1] : vector<8x16xf32> to vector<8xf32>
    %31 = vector.shape_cast %30 : vector<8xf32> to vector<8x1xf32>
    %32 = vector.extract_strided_slice %26 {offsets = [0, 16], sizes = [8, 16], strides = [1, 1]} : vector<8x128xf32> to vector<8x16xf32>
    %33 = arith.mulf %32, %27 : vector<8x16xf32>
    %cst_15 = arith.constant dense<0.000000e+00> : vector<8xf32>
    %34 = vector.multi_reduction <add>, %33, %cst_15 [1] : vector<8x16xf32> to vector<8xf32>
    %35 = vector.shape_cast %34 : vector<8xf32> to vector<8x1xf32>
    %36 = vector.broadcast %4 : vector<1x128xf32> to vector<8x128xf32>
    %37 = arith.addf %26, %36 : vector<8x128xf32>
    %38 = vector.broadcast %31 : vector<8x1xf32> to vector<8x128xf32>
    %39 = vector.broadcast %5 : vector<1x128xf32> to vector<8x128xf32>
    %40 = arith.mulf %38, %39 : vector<8x128xf32>
    %41 = arith.addf %37, %40 : vector<8x128xf32>
    %42 = vector.broadcast %35 : vector<8x1xf32> to vector<8x128xf32>
    %43 = vector.broadcast %6 : vector<1x128xf32> to vector<8x128xf32>
    %44 = arith.mulf %42, %43 : vector<8x128xf32>
    %45 = arith.addf %41, %44 : vector<8x128xf32>
    %c0_16 = arith.constant 0 : index
    %c0_17 = arith.constant 0 : index
    %46 = vector.load %arg4[%c0_16, %c0_17] : memref<8x128xf32, #tpu.memory_space<vmem>>, vector<8x128xf32>
    tpu.vector_store %arg4[%c0_16, %c0_17], %45 {strides = array<i32>} : memref<8x128xf32, #tpu.memory_space<vmem>>, vector<8x128xf32>,
    %c0_18 = arith.constant 0 : index
    %c0_19 = arith.constant 0 : index
    %47 = vector.load %arg3[%c0_18, %c0_19] : memref<8x2xf32, #tpu.memory_space<vmem>>, vector<8x2xf32>
    %48 = vector.extract_strided_slice %47 {offsets = [0, 0], sizes = [8, 1], strides = [1, 1]} : vector<8x2xf32> to vector<8x1xf32>
    %49 = vector.extract_strided_slice %47 {offsets = [0, 1], sizes = [8, 1], strides = [1, 1]} : vector<8x2xf32> to vector<8x1xf32>
    %50 = vector.extract_strided_slice %45 {offsets = [0, 32], sizes = [8, 1], strides = [1, 1]} : vector<8x128xf32> to vector<8x1xf32>
    %51 = vector.extract_strided_slice %45 {offsets = [0, 33], sizes = [8, 1], strides = [1, 1]} : vector<8x128xf32> to vector<8x1xf32>
    %52 = arith.maximumf %50, %51 : vector<8x1xf32>
    %53 = arith.subf %50, %52 : vector<8x1xf32>
    %54 = math.exp %53 : vector<8x1xf32>
    %55 = arith.subf %51, %52 : vector<8x1xf32>
    %56 = math.exp %55 : vector<8x1xf32>
    %57 = arith.addf %54, %56 : vector<8x1xf32>
    %58 = math.log %57 : vector<8x1xf32>
    %59 = arith.addf %52, %58 : vector<8x1xf32>
    %cst_20 = arith.constant 5.000000e-01 : f32
    %60 = vector.broadcast %cst_20 : f32 to vector<8x1xf32>
    %61 = arith.cmpf ogt, %48, %60 : vector<8x1xf32>
    %62 = arith.select %61, %51, %50 : vector<8x1xi1>, vector<8x1xf32>
    %63 = arith.subf %59, %62 : vector<8x1xf32>
    %64 = arith.mulf %63, %49 : vector<8x1xf32>
    %65 = vector.shape_cast %64 : vector<8x1xf32> to vector<1x8x1xf32>
    %cst_21 = arith.constant dense<0.000000e+00> : vector<1xf32>
    %66 = vector.multi_reduction <add>, %65, %cst_21 [1, 2] : vector<1x8x1xf32> to vector<1xf32>
    %67 = vector.shape_cast %66 : vector<1xf32> to vector<1x1x1xf32>
    %68 = vector.extract %67[0, 0, 0] : f32 from vector<1x1x1xf32>
    %69 = vector.shape_cast %49 : vector<8x1xf32> to vector<1x8x1xf32>
    %cst_22 = arith.constant dense<0.000000e+00> : vector<1xf32>
    %70 = vector.multi_reduction <add>, %69, %cst_22 [1, 2] : vector<1x8x1xf32> to vector<1xf32>
    %71 = vector.shape_cast %70 : vector<1xf32> to vector<1x1x1xf32>
    %72 = vector.extract %71[0, 0, 0] : f32 from vector<1x1x1xf32>
    %cst_23 = arith.constant 1.000000e+00 : f32
    %73 = arith.maximumf %72, %cst_23 : f32
    %74 = arith.divf %68, %73 : f32
    %c0_24 = arith.constant 0 : index
    %75 = memref.load %arg5[%c0_24] : memref<1xf32, #tpu.memory_space<smem>>
    memref.store %74, %arg5[%c0_24] : memref<1xf32, #tpu.memory_space<smem>>
    return
  }
}

</mosaic_0001>

<bundles_post_ra>
// kernel: re_logits_loss_pallas.1
= control target key start
LH: loop header
LB: loop body
LE: loop exit
PB: predicated region body
PF: predicated region fallthrough
CT: control target
= control target key end

     0   :  { %11 = vsyncpa [#allocation3], 0  ;;  %s853_s0 = inlined_call_operand.vmem [shape: f32[8,128], index: 0, kind: input, shape index: {}]   ;;  %s854_s1 = inlined_call_operand.hbm [shape: bf16[3,128,128], index: 1, kind: input, shape index: {}]   ;;  %s855_s2 = inlined_call_operand.vmem [shape: f32[8,128], index: 2, kind: input, shape index: {}]   ;;  %s856_s3 = inlined_call_operand.vmem [shape: f32[8,2], index: 3, kind: input, shape index: {}]   ;;  %s857_s4 = inlined_call_operand.hbm [shape: f32[8,128], index: 4, kind: output, shape index: {0}]   ;;  %s858_s5 = inlined_call_operand.hbm [shape: f32[1], index: 5, kind: output, shape index: {1}]  }
   0x1   :  { %12 = vsyncpa [#allocation4], 0 }
   0x2   :  { %13 = vsyncpa [#allocation5], 0  ;;  %s729_s18 = smov [#allocation2]   ;;  %s669_s22 = scalar_lea.hbm %s854_s1, 3072 }
   0x3   :  { %s21_s19 = sshll.u32 %s729_s18, 4  ;;  %p670_p0 = scmp.ne.s32.totalorder %s854_s1, %s669_s22  ;;  %s22_s19 = int_to_ptr.vmem [resolvable:$true] %s21_s19 }
   0x4   :  { %p673_p1 = scmp.lt.u32.totalorder %s669_s22, %s854_s1 }
   0x6   :  { %p675_p2 = pnand %p673_p1, %p670_p0 }
   0x8   :  { %678 = shalt.err (!%p675_p2)
}
   0x9   :  { %s679_s27 = scalar_lea.vmem %s22_s19, 3072  ;;  %p684_p4 = scmp.lt.s32.totalorder %s22_s19, %s22_s19 }
   0xa   :  { %p680_p3 = scmp.ne.s32.totalorder %s22_s19, %s679_s27  ;;  %p685_p5 = scmp.lt.s32.totalorder %s679_s27, %s679_s27 }
   0xc   :  { %p686_p6 = por %p685_p5, %p684_p4 }
   0xe   :  { %p687_p7 = pnand %p686_p6, %p680_p3 }
  0x10   :  { %690 = shalt.err (!%p687_p7)
}
  0x11   :  { %s730_s28 = smov 64   ;;  %s731_s29 = smov 4  }
  0x12   :  { %27 = dma.hbm_to_vmem [thread:$0]  %s854_s1, 3072, %s22_s19, [#allocation3], %s730_s28, %s730_s28, %s731_s29  }
  0x13   :  { %723 = dma.done.wait [#allocation3], 3072  }
  0x14   :  { %724 = vsyncadd [#allocation3], 4294964224  ;;  %v732_v0 = vmov 0.0   ;;  %vm733_vm0 = vmmov 0   ;;  %v637_v1 = vld [vmem:[#allocation2] sm:$0xff]   ;;  %v638_v2 = vld [vmem:[#allocation2 + $0x8] sm:$0xff]   ;;  %v89_v25 = vlaneseq }
  0x15   :  { %556 = vmatprep.subr.bf16.mxu0 %v732_v0  ;;  %572 = vmatprep.mubr.msk.bf16.mxu0 %vm733_vm0, %v732_v0  ;;  %v639_v3 = vld [vmem:[#allocation2 + $0x10] sm:$0xff]   ;;  %v645_v4 = vld [vmem:[#allocation2 + $0x40] sm:$0xff]   ;;  %v640_v5 = vld [vmem:[#allocation2 + $0x18] sm:$0xff]   ;;  %vm370_vm1 = vcmask 130048   ;;  %s735_s9 = smov 127   ;;  %s736_s10 = smov 95  }
  0x16   :  { %576 = vmatprep.subr.bf16.mxu1 %v732_v0  ;;  %592 = vmatprep.mubr.msk.bf16.mxu1 %vm733_vm0, %v732_v0  ;;  %v646_v6 = vld [vmem:[#allocation2 + $0x48] sm:$0xff]   ;;  %v641_v7 = vld [vmem:[#allocation2 + $0x20] sm:$0xff]   ;;  %v647_v8 = vld [vmem:[#allocation2 + $0x50] sm:$0xff]   ;;  %v90_v26 = vshrl.u32 %v89_v25, 7  ;;  %s737_s11 = smov 96   ;;  %s738_s12 = smov 1  }
  0x17   :  { %557 = vmatpush3.bf16.msra.mxu0 %v637_v1  ;;  %577 = vmatpush3.bf16.msra.mxu1 %v645_v4  ;;  %v642_v9 = vld [vmem:[#allocation2 + $0x28] sm:$0xff]   ;;  %v648_v10 = vld [vmem:[#allocation2 + $0x58] sm:$0xff]   ;;  %v643_v11 = vld [vmem:[#allocation2 + $0x30] sm:$0xff]   ;;  %s739_s15 = smov 31   ;;  %s740_s16 = smov 32   ;;  %vm446_vm3 = vcmask 7168  }
  0x18   :  { %558 = vmatprep.subr.bf16.mxu0 %v732_v0  ;;  %578 = vmatprep.subr.bf16.mxu1 %v732_v0  ;;  %v649_v12 = vld [vmem:[#allocation2 + $0x60] sm:$0xff]   ;;  %v644_v13 = vld [vmem:[#allocation2 + $0x38] sm:$0xff]   ;;  %v650_v15 = vld [vmem:[#allocation2 + $0x68] sm:$0xff]   ;;  %v91_v27 = vsub.s32 0, %v90_v26  ;;  %v185_v39 = vsub.s32 1, %v90_v26  ;;  %v389_v58 = vsub.s32 3, %v90_v26 }
  0x19   :  { %v36_v14 = vld [vmem:[%s853_s0] sm:$0xff]  ;;  %v651_v17 = vld [vmem:[#allocation2 + $0x70] sm:$0xff]   ;;  %v652_v18 = vld [vmem:[#allocation2 + $0x78] sm:$0xff]   ;;  %v384_v59 = vsub.s32 2, %v90_v26  ;;  %v395_v61 = vsub.s32 4, %v90_v26 }
  0x1a   :  { %v88_v16 = vpack.c.bf16 %v36_v14, %v36_v14  ;;  %v653_v19 = vld [vmem:[#allocation2 + $0x80] sm:$0xff]   ;;  %v654_v20 = vld [vmem:[#allocation2 + $0x88] sm:$0xff]   ;;  %v655_v21 = vld [vmem:[#allocation2 + $0x90] sm:$0xff]  }
  0x1b   :  { %559 = vmatpush3.bf16.msra.mxu0 %v638_v2  ;;  %579 = vmatpush3.bf16.msra.mxu1 %v646_v6  ;;  %v656_v22 = vld [vmem:[#allocation2 + $0x98] sm:$0xff]   ;;  %v657_v23 = vld [vmem:[#allocation2 + $0xa0] sm:$0xff]   ;;  %v658_v24 = vld [vmem:[#allocation2 + $0xa8] sm:$0xff]  }
  0x1c   :  { %560 = vmatprep.subr.bf16.mxu0 %v732_v0  ;;  %580 = vmatprep.subr.bf16.mxu1 %v732_v0  ;;  %v37_v28 = vld [vmem:[%s855_s2] sm:$0xff]  ;;  %v659_v37 = vld [vmem:[#allocation2 + $0xb0] sm:$0xff]   ;;  %v660_v38 = vld [vmem:[#allocation2 + $0xb8] sm:$0xff]   ;;  %s734_s2 = smov 112  }
  0x1d   :  { %v92_v29 = vrot.slane %v37_v28, %v91_v27  ;;  %v186_v40 = vrot.slane %v37_v28, %v185_v39  ;;  %v390_v60 = vrot.slane %v37_v28, %v389_v58  ;;  %v385_v63 = vrot.slane %v37_v28, %v384_v59 }
  0x1e   :  { %v396_v1 = vrot.slane %v37_v28, %v395_v61 }
  0x1f   :  { %561 = vmatpush3.bf16.msra.mxu0 %v639_v3  ;;  %581 = vmatpush3.bf16.msra.mxu1 %v647_v8 }
  0x20   :  { %562 = vmatprep.subr.bf16.mxu0 %v732_v0  ;;  %582 = vmatprep.subr.bf16.mxu1 %v732_v0 }
  0x23   :  { %563 = vmatpush3.bf16.msra.mxu0 %v640_v5  ;;  %583 = vmatpush3.bf16.msra.mxu1 %v648_v10 }
  0x24   :  { %564 = vmatprep.subr.bf16.mxu0 %v732_v0  ;;  %584 = vmatprep.subr.bf16.mxu1 %v732_v0 }
  0x27   :  { %565 = vmatpush3.bf16.msra.mxu0 %v641_v7  ;;  %585 = vmatpush3.bf16.msra.mxu1 %v649_v12 }
  0x28   :  { %566 = vmatprep.subr.bf16.mxu0 %v732_v0  ;;  %586 = vmatprep.subr.bf16.mxu1 %v732_v0 }
  0x2b   :  { %567 = vmatpush3.bf16.msra.mxu0 %v642_v9  ;;  %587 = vmatpush3.bf16.msra.mxu1 %v650_v15  ;;  %v400_v9 = vld [vmem:[%s856_s3] sm:$0xff]  ;;  %s741_s3 = smov [#allocation6]  }
  0x2c   :  { %568 = vmatprep.subr.bf16.mxu0 %v732_v0  ;;  %588 = vmatprep.subr.bf16.mxu1 %v732_v0  ;;  %vm424_vm2 = vcmp.gt.f32.partialorder %v400_v9, 0.5  ;;  %s483_s17 = sshll.u32 %s741_s3, 4  ;;  %s484_s17 = int_to_ptr.vmem [resolvable:$true] %s483_s17 }
  0x2d   :  { %s691_s18 = scalar_lea.vmem %s484_s17, 128  ;;  %p696_p9 = scmp.lt.s32.totalorder %s484_s17, %s484_s17 }
  0x2e   :  { %p692_p8 = scmp.ne.s32.totalorder %s484_s17, %s691_s18  ;;  %p697_p10 = scmp.lt.s32.totalorder %s691_s18, %s691_s18 }
  0x2f   :  { %569 = vmatpush3.bf16.msra.mxu0 %v643_v11  ;;  %589 = vmatpush3.bf16.msra.mxu1 %v651_v17 }
  0x30   :  { %570 = vmatprep.subr.bf16.mxu0 %v732_v0  ;;  %590 = vmatprep.subr.bf16.mxu1 %v732_v0  ;;  %p698_p11 = por %p697_p10, %p696_p9 }
  0x32   :  { %p699_p12 = pnand %p698_p11, %p692_p8 }
  0x33   :  { %571 = vmatpush3.bf16.msra.mxu0 %v644_v13  ;;  %591 = vmatpush3.bf16.msra.mxu1 %v652_v18 }
  0x34   :  { %596 = vmatprep.subr.bf16.mxu0 %v732_v0 }
  0x36   :  { %573 = vmatmul.mubr.bf16.vlgmr.msra.gmra.mrb[0].mxu0 %v88_v16 }
  0x37   :  { %612 = vmatprep.mubr.msk.bf16.mxu0 %vm733_vm0, %v732_v0  ;;  %597 = vmatpush3.bf16.msra.mxu0 %v653_v19 }
  0x38   :  { %598 = vmatprep.subr.bf16.mxu0 %v732_v0 }
  0x3b   :  { %599 = vmatpush3.bf16.msra.mxu0 %v654_v20 }
  0x3c   :  { %600 = vmatprep.subr.bf16.mxu0 %v732_v0 }
  0x3f   :  { %601 = vmatpush3.bf16.msra.mxu0 %v655_v21 }
  0x40   :  { %602 = vmatprep.subr.bf16.mxu0 %v732_v0 }
  0x43   :  { %603 = vmatpush3.bf16.msra.mxu0 %v656_v22 }
  0x44   :  { %604 = vmatprep.subr.bf16.mxu0 %v732_v0 }
  0x47   :  { %605 = vmatpush3.bf16.msra.mxu0 %v657_v23 }
  0x48   :  { %606 = vmatprep.subr.bf16.mxu0 %v732_v0 }
  0x4b   :  { %607 = vmatpush3.bf16.msra.mxu0 %v658_v24 }
  0x4c   :  { %608 = vmatprep.subr.bf16.mxu0 %v732_v0 }
  0x4f   :  { %609 = vmatpush3.bf16.msra.mxu0 %v659_v37 }
  0x50   :  { %610 = vmatprep.subr.bf16.mxu0 %v732_v0 }
  0x53   :  { %611 = vmatpush3.bf16.msra.mxu0 %v660_v38 }
 0x109   :  { %v175_v30 = vpop.f32.mrb[0].mxu0 }
 0x10a   :  { %v176_v31 = vadd.f32 %v175_v30, %v92_v29  ;;  %v574_v32 = vpop.f32.mrb[1].mxu0 }
 0x10b   :  { %v178_v33 = vpop.f32.mrb[2].mxu0 }
 0x10c   :  { %v181_v34 = vmax.f32 %v176_v31, 0.0  ;;  %v575_v35 = vpop.f32.mrb[3].mxu0 }
 0x10e   :  { %v182_v36 = vpack.c.bf16 %v181_v34, %v181_v34 }
 0x110   :  { %593 = vmatmul.mubr.bf16.vlgmr.msra.gmra.mrb[0].mxu1 %v182_v36 }
 0x1e3   :  { %v269_v41 = vpop.f32.mrb[0].mxu1 }
 0x1e4   :  { %v270_v42 = vadd.f32 %v269_v41, %v186_v40  ;;  %v594_v43 = vpop.f32.mrb[1].mxu1 }
 0x1e5   :  { %v272_v44 = vpop.f32.mrb[2].mxu1 }
 0x1e6   :  { %v275_v45 = vmax.f32 %v270_v42, 0.0  ;;  %v595_v46 = vpop.f32.mrb[3].mxu1 }
 0x1e8   :  { %v276_v47 = vpack.c.bf16 %v275_v45, %v275_v45  ;;  %366 = vrot.lane.b32.xlu0 %v275_v45, %s734_s2 }
 0x1ea   :  { %613 = vmatmul.mubr.bf16.vlgmr.msra.gmra.mrb[4].mxu0 %v276_v47 }
 0x25a   :  { %v367_v48 = vpop.permute.xlu0 %366 }
 0x2bd   :  { %v359_v49 = vpop.f32.mrb[4].mxu0 }
 0x2be   :  { %v374_v50 = vmul.f32 %v359_v49, %v275_v45  ;;  %v614_v51 = vpop.f32.mrb[5].mxu0  ;;  %v369_v52 = vmul.f32 %v367_v48, %v359_v49  ;;  %v386_v2 = vadd.f32 %v385_v63, %v359_v49 }
 0x2bf   :  { %v362_v53 = vpop.f32.mrb[6].mxu0 }
 0x2c0   :  { %376 = vrot.lane.b32.xlu0 %v374_v50, %s734_s2  ;;  %v615_v54 = vpop.f32.mrb[7].mxu0  ;;  %v371_v55 = vsel %vm370_vm1, %v369_v52, 0.0 }
 0x2c1   :  { %372 = vadd.xlane.f32.xlu1 %v371_v55 }
 0x332   :  { %v377_v56 = vpop.permute.xlu0 %376 }
 0x333   :  { %v379_v57 = vsel %vm370_vm1, %v377_v56, 0.0 }
 0x334   :  { %380 = vadd.xlane.f32.xlu1 %v379_v57 }
 0x34e   :  { %v373_v62 = vpop.xlane.xlu1 %372 }
 0x34f   :  { %v391_v0 = vmul.f32 %v390_v60, %v373_v62 }
 0x351   :  { %v392_v4 = vadd.f32 %v391_v0, %v386_v2 }
 0x3c1   :  { %v381_v3 = vpop.xlane.xlu1 %380 }
 0x3c2   :  { %v397_v5 = vmul.f32 %v396_v1, %v381_v3 }
 0x3c4   :  { %v398_v6 = vadd.f32 %v397_v5, %v392_v4 }
 0x3c6   :  { %399 = vst [vmem:[#allocation6] sm:$0xff] %v398_v6  ;;  %402 = vrot.lane.b32.xlu0 %v398_v6, %s735_s9 }
 0x3ca   :  { %425 = vrot.lane.b32.xlu0 %v398_v6, %s736_s10 }
 0x3ce   :  { %428 = vrot.lane.b32.xlu0 %v398_v6, %s737_s11 }
 0x438   :  { %v403_v7 = vpop.permute.xlu0 %402 }
 0x439   :  { %v405_v8 = vmax.f32 %v398_v6, %v403_v7 }
 0x43b   :  { %410 = vrot.lane.b32.xlu1 %v405_v8, %s738_s12  ;;  %v406_v20 = vsub.f32 %v398_v6, %v405_v8 }
 0x43c   :  { %v426_v13 = vpop.permute.xlu0 %425 }
 0x43d   :  { %v407_v21 = vmul.f32 1.442695, %v406_v20 }
 0x43f   :  { %438 = vrot.lane.b32.xlu1 %v400_v9, %s739_s15 }
 0x440   :  { %v429_v15 = vpop.permute.xlu0 %428 }
 0x441   :  { %v431_v16 = vsel %vm424_vm2, %v426_v13, %v429_v15 }
 0x443   :  { %457 = vrot.lane.b32.xlu1 %v400_v9, %s735_s9 }
 0x4ad   :  { %v411_v10 = vpop.permute.xlu1 %410 }
 0x4ae   :  { %v413_v11 = vsub.f32 %v398_v6, %v411_v10 }
 0x4b0   :  { %v414_v12 = vmul.f32 1.442695, %v413_v11 }
 0x4b1   :  { %v439_v17 = vpop.permute.xlu1 %438 }
 0x4b2   :  { %661 = vpow2.f32 %v414_v12 }
 0x4b3   :  { %663 = vpow2.f32 %v407_v21 }
 0x4b5   :  { %v458_v18 = vpop.permute.xlu1 %457 }
 0x4b6   :  { %v460_v19 = vsel %vm446_vm3, %v458_v18, 0.0 }
 0x4b7   :  { %461 = vadd.xlane.f32.xlu1 %v460_v19 }
 0x4bc   :  { %v662_v14 = vpop.eup %661 }
 0x4bd   :  { %417 = vrot.lane.b32.xlu0 %v662_v14, %s735_s9  ;;  %v664_v22 = vpop.eup %663 }
 0x4c1   :  { %433 = vrot.lane.b32.xlu0 %v431_v16, %s740_s16 }
 0x52f   :  { %v418_v23 = vpop.permute.xlu0 %417 }
 0x530   :  { %v420_v24 = vadd.f32 %v664_v22, %v418_v23 }
 0x532   :  { %665 = vlog2.f32 %v420_v24 }
 0x533   :  { %v434_v28 = vpop.permute.xlu0 %433 }
 0x53c   :  { %v666_v25 = vpop.eup %665 }
 0x53d   :  { %v422_v26 = vmul.f32 0.6931472, %v666_v25 }
 0x53f   :  { %v423_v27 = vadd.f32 %v422_v26, %v405_v8 }
 0x541   :  { %v436_v29 = vsub.f32 %v423_v27, %v434_v28 }
 0x543   :  { %v441_v30 = vmul.f32 %v439_v17, %v436_v29 }
 0x544   :  { %v462_v33 = vpop.xlane.xlu1 %461 }
 0x545   :  { %443 = vrot.lane.b32.xlu0 %v441_v30, %s737_s11  ;;  %v463_v34 = vrot.slane %v462_v33, 4 }
 0x547   :  { %v464_v35 = vadd.f32 %v463_v34, %v462_v33 }
 0x549   :  { %v465_v36 = vrot.slane %v464_v35, 2 }
 0x5b7   :  { %v444_v31 = vpop.permute.xlu0 %443 }
 0x5b8   :  { %v447_v32 = vsel %vm446_vm3, %v444_v31, 0.0 }
 0x5b9   :  { %448 = vadd.xlane.f32.xlu0 %v447_v32 }
 0x646   :  { %v449_v37 = vpop.xlane.xlu0 %448 }
 0x647   :  { %v450_v38 = vrot.slane %v449_v37, 4 }
 0x648   :  { %702 = shalt.err (!%p699_p12)
}
 0x649   :  { %s703_s21 = scalar_lea.hbm %s857_s4, 128 }
 0x64a   :  { %p704_p13 = scmp.ne.s32.totalorder %s857_s4, %s703_s21  ;;  %p707_p0 = scmp.lt.u32.totalorder %s703_s21, %s857_s4 }
 0x64c   :  { %p709_p1 = pnand %p707_p0, %p704_p13 }
 0x64e   :  { %712 = shalt.err (!%p709_p1)
}
 0x64f   :  { %486 = dma.vmem_to_hbm [thread:$0]  %s484_s17, 128, %s857_s4, [#allocation4]   ;;  %v451_v39 = vadd.f32 %v450_v38, %v449_v37  ;;  %v466_v40 = vadd.f32 %v465_v36, %v464_v35 }
 0x650   :  { %s742_s30 = smov 1.0   ;;  %s713_s8 = scalar_lea.hbm %s858_s5, 16 }
 0x651   :  { %v452_v41 = vrot.slane %v451_v39, 2  ;;  %v467_v43 = vrot.slane %v466_v40, 1  ;;  %p714_p2 = scmp.ne.s32.totalorder %s858_s5, %s713_s8  ;;  %p717_p3 = scmp.lt.u32.totalorder %s713_s8, %s858_s5 }
 0x653   :  { %v453_v42 = vadd.f32 %v452_v41, %v451_v39  ;;  %v468_v46 = vadd.f32 %v467_v43, %v466_v40  ;;  %p719_p4 = pnand %p717_p3, %p714_p2 }
 0x655   :  { %v454_v44 = vrot.slane %v453_v42, 1 }
 0x657   :  { %v455_v45 = vadd.f32 %v454_v44, %v453_v42 }
 0x659   :  { %616 = vpush %v455_v45 }
 0x65a   :  { %618 = vpush %v468_v46 }
 0x68a   :  { %s617_s28 = spop %616 }
 0x68b   :  { %s619_s29 = spop %618 }
 0x68c   :  { %s470_s6 = smax.f32 %s742_s30, %s619_s29 }
 0x68d   :  { %v471_v47 = vstv %s470_s6 }
 0x68e   :  { %667 = vrcp.f32 %v471_v47 }
 0x698   :  { %v668_v48 = vpop.eup %667 }
 0x699   :  { %620 = vpush %v668_v48 }
 0x6ca   :  { %s621_s1 = spop %620 }
 0x6cb   :  { %s474_s4 = smul.f32 %s621_s1, %s617_s28 }
 0x6cd   :  { %476 = sst [smem:[#allocation7]] %s474_s4 }
 0x6ce   :  { %722 = shalt.err (!%p719_p4)
}
 0x6cf   :  { %s743_s12 = smov [#allocation7]  }
 0x6d0   :  { %494 = dma.smem_to_hbm %s743_s12, 16, %s858_s5, [#allocation5]  }
 0x6d1   :  { %725 = dma.done.wait [#allocation4], 128  }
 0x6d2   :  { %726 = vsyncadd [#allocation4], 4294967168 }
 0x6d3   :  { %727 = dma.done.wait [#allocation5], 16  }
 0x6d4   :  { %728 = vsyncadd [#allocation5], 4294967280 }
 0x6d5   :  { %501 = sfence }
 0x6d6   :  { %502 = vsyncpa [#allocation3], 1 }
 0x6d7   :  { %503 = vsyncpa [#allocation4], 1 }
 0x6d8   :  { %504 = vsyncpa [#allocation5], 1 }

</bundles_post_ra>
